<compile_context>
chip_gen: v6e
topology: v6e:2x2x1
jax: 0.10.0
libtpu: 0.0.40
codegen_flags: <defaults>
</compile_context>

<pallas_src>
import math

import jax
import jax.numpy as jnp
from jax.experimental import pallas as pl
from jax.experimental.pallas import tpu as pltpu


# --------------------------------------------------------------------------- #
# Generation-aware VMEM budget / compiler params
# --------------------------------------------------------------------------- #

def _vmem_budget_bytes():
    """~0.75x of the chip's physical VMEM (v5e/v6e: ~96 MiB, v7x: ~48 MiB)."""
    cap = 64 << 20  # conservative fallback (v7x-sized) if the query fails
    try:
        info = pltpu.get_tpu_info()
        cap = int(getattr(info, "vmem_capacity_bytes", cap))
    except Exception:
        pass
    return (cap * 3) // 4


def _compiler_params(vmem_needed_bytes, dims, budget):
    limit = int(min(max(vmem_needed_bytes, 16 << 20), max(budget, 16 << 20)))
    return pltpu.CompilerParams(dimension_semantics=dims, vmem_limit_bytes=limit)


# --------------------------------------------------------------------------- #
# Layout helpers
# --------------------------------------------------------------------------- #

def _fold_factor(C, HW):
    """Fold k spatial positions into the lane axis so k*C is a multiple of 128."""
    k = 128 // math.gcd(C, 128)
    if 1 < k <= 32 and HW % k == 0:
        return k
    return 1


def _pick_hw_tile(hw, c, itemsize, target_bytes):
    """Largest divisor of hw (in dtype-aligned sublane steps) <= target_bytes."""
    step = 8 * max(1, 4 // itemsize)          # 8 rows f32, 16 bf16, 32 int8/fp8
    row_bytes = max(1, c * itemsize)
    max_rows = min(hw, target_bytes // row_bytes)
    max_rows = (max_rows // step) * step
    for t in range(max_rows, step - 1, -step):
        if hw % t == 0:
            return t
    return hw                                  # full extent is always legal


def _pick_batch(n, per_img_bytes, vmem_avail, target_bytes=8 << 20):
    """Largest divisor of n whose fused-block footprint fits budget/target."""
    best = 1
    for b in range(1, n + 1):
        if n % b != 0:
            continue
        if (b * per_img_bytes <= vmem_avail
                and b * per_img_bytes <= max(target_bytes, per_img_bytes)):
            best = b
    return best


def _excite(sums, wdt, bd, wut, bu, k, inv_total):
    """Squeeze-excite from per-lane sums of the (possibly lane-folded) rows.

    sums: (B, k*C) f32 sums over the folded spatial rows.
    Returns the per-lane scale (B, k*C) f32 (already tiled over the k groups).
    """
    kc = sums.shape[-1]
    c = kc // k
    pooled = sums[:, 0:c]
    for j in range(1, k):                      # reduce the k fold groups (tiny)
        pooled = pooled + sums[:, j * c:(j + 1) * c]
    pooled = pooled * inv_total                                       # (B, C)
    hidden = jnp.dot(pooled, wdt, preferred_element_type=jnp.float32) + bd
    hidden = jnp.maximum(hidden, 0.0)                                 # (B, I)
    scale = jax.nn.sigmoid(
        jnp.dot(hidden, wut, preferred_element_type=jnp.float32) + bu)  # (B, C)
    if k > 1:
        scale = jnp.concatenate([scale] * k, axis=-1)                 # (B, k*C)
    return scale


# --------------------------------------------------------------------------- #
# Path 1: fused BlockSpec path (small / medium planes, B images per step)
# --------------------------------------------------------------------------- #

def _make_fused_kernel(k, inv_total):
    def kernel(x_ref, wdt_ref, bd_ref, wut_ref, bu_ref, o_ref):
        x = x_ref[...]                                        # (B, HW, CF)
        sums = jnp.sum(x.astype(jnp.float32), axis=1)         # (B, CF) f32
        scale = _excite(sums, wdt_ref[...], bd_ref[...], wut_ref[...],
                        bu_ref[...], k, inv_total)            # (B, CF) f32
        # Multiply in f32 (v5e has no bf16 VALU), cast only at the store.
        o_ref[...] = (x.astype(jnp.float32) * scale[:, None, :]).astype(o_ref.dtype)
    return kernel


def _se_fused(x_flat, wdt, bd, wut, bu, k, *, batch, budget, donate_input=False):
    N, HW, CF = x_flat.shape
    C, I = wdt.shape
    itemsize = jnp.dtype(x_flat.dtype).itemsize
    plane_bytes = HW * CF * itemsize
    per_img = 4 * plane_bytes + (HW * CF * 4 if itemsize < 4 else 0)
    param_bytes = (2 * C * I + C + I) * 4
    need = batch * per_img + 2 * param_bytes + (2 << 20)
    cost = pl.CostEstimate(
        flops=int(N * (2 * HW * CF + 4 * C * I)),
        transcendentals=int(N * C),
        bytes_accessed=int(2 * N * plane_bytes + param_bytes),
    )
    return pl.pallas_call(
        _make_fused_kernel(k, 1.0 / (HW * k)),
        out_shape=jax.ShapeDtypeStruct((N, HW, CF), x_flat.dtype),
        grid_spec=pltpu.PrefetchScalarGridSpec(
            num_scalar_prefetch=0,
            grid=(N // batch,),
            in_specs=[
                pl.BlockSpec((batch, HW, CF), lambda g: (g, 0, 0)),
                pl.BlockSpec(wdt.shape, lambda g: (0, 0)),
                pl.BlockSpec(bd.shape, lambda g: (0, 0)),
                pl.BlockSpec(wut.shape, lambda g: (0, 0)),
                pl.BlockSpec(bu.shape, lambda g: (0, 0)),
            ],
            out_specs=pl.BlockSpec((batch, HW, CF), lambda g: (g, 0, 0)),
        ),
        compiler_params=_compiler_params(need, ("parallel",), budget),
        cost_estimate=cost,
        input_output_aliases=({0: 0} if donate_input else {}),
    )(x_flat, wdt, bd, wut, bu)


# --------------------------------------------------------------------------- #
# Path 2: manual resident-plane single-HBM-read pipeline (large planes)
# --------------------------------------------------------------------------- #

def _make_resident_kernel(HW, CF, tile, k, inv_total):
    T = HW // tile

    def kernel(x_hbm, wdt_ref, bd_ref, wut_ref, bu_ref, o_hbm,
               plane, obuf, in_sems, out_sems):
        n = pl.program_id(0)
        row0 = n * HW                      # image n's first row in the flat HBM view

        def in_copy(s, slot):
            return pltpu.make_async_copy(
                x_hbm.at[pl.ds(row0 + s * tile, tile), :],
                plane.at[pl.ds(s * tile, tile), :],
                in_sems.at[slot])

        def out_copy(s, slot):
            return pltpu.make_async_copy(
                obuf.at[slot],
                o_hbm.at[pl.ds(row0 + s * tile, tile), :],
                out_sems.at[slot])

        # ---- Phase 1: stream chunks into the resident plane (window = 2),
        #      accumulating the f32 pool as chunks land.
        in_copy(0, 0).start()
        if T > 1:
            in_copy(1, 1).start()

        def pool_step(s, acc):
            slot = s % 2
            in_copy(s, slot).wait()

            @pl.when(s + 2 < T)
            def _prefetch():
                in_copy(s + 2, slot).start()

            off = s * tile
            if tile % 8 == 0:
                off = pl.multiple_of(off, 8)
            rows = plane[pl.ds(off, tile), :]
            return acc + jnp.sum(rows.astype(jnp.float32), axis=0, keepdims=True)

        sums = jax.lax.fori_loop(0, T, pool_step,
                                 jnp.zeros((1, CF), jnp.float32))

        # ---- Phase 2: excitation (tiny).
        scale = _excite(sums, wdt_ref[...], bd_ref[...], wut_ref[...],
                        bu_ref[...], k, inv_total)            # (1, CF) f32

        # ---- Phase 3: scale chunks of the resident plane and stream them out
        #      through a double-buffered VMEM tile.
        def mul_step(s, carry):
            slot = s % 2

            @pl.when(s >= 2)
            def _drain_prev():
                out_copy(s - 2, slot).wait()

            off = s * tile
            if tile % 8 == 0:
                off = pl.multiple_of(off, 8)
            rows = plane[pl.ds(off, tile), :]
            obuf[slot] = (rows.astype(jnp.float32) * scale).astype(obuf.dtype)
            out_copy(s, slot).start()
            return carry

        jax.lax.fori_loop(0, T, mul_step, 0)

        for w in range(min(2, T)):          # drain the last output DMAs
            s = T - min(2, T) + w
            out_copy(s, s % 2).wait()

    return kernel


def _se_resident(x_flat, wdt, bd, wut, bu, k, *, chunk_rows=None, budget,
                 donate_input=False):
    N, HW, CF = x_flat.shape
    C, I = wdt.shape
    itemsize = jnp.dtype(x_flat.dtype).itemsize
    if chunk_rows is None:
        chunk_rows = _pick_hw_tile(HW, CF, itemsize, target_bytes=2 << 20)
    assert HW % chunk_rows == 0, "chunk_rows must divide the (folded) H*W extent"
    plane_bytes = HW * CF * itemsize
    tile_bytes = chunk_rows * CF * itemsize
    param_bytes = (2 * C * I + C + I) * 4
    need = (plane_bytes + 2 * tile_bytes + chunk_rows * CF * 4
            + 2 * param_bytes + (4 << 20))
    cost = pl.CostEstimate(
        flops=int(N * (2 * HW * CF + 4 * C * I)),
        transcendentals=int(N * C),
        bytes_accessed=int(2 * N * plane_bytes + param_bytes),
    )
    x2d = x_flat.reshape(N * HW, CF)        # free reshape; simple 2-D DMA indexing
    out = pl.pallas_call(
        _make_resident_kernel(HW, CF, chunk_rows, k, 1.0 / (HW * k)),
        out_shape=jax.ShapeDtypeStruct((N * HW, CF), x_flat.dtype),
        grid_spec=pltpu.PrefetchScalarGridSpec(
            num_scalar_prefetch=0,
            grid=(N,),
            in_specs=[
                pl.BlockSpec(memory_space=pl.ANY),        # x stays in HBM
                pl.BlockSpec(wdt.shape, lambda n: (0, 0)),
                pl.BlockSpec(bd.shape, lambda n: (0, 0)),
                pl.BlockSpec(wut.shape, lambda n: (0, 0)),
                pl.BlockSpec(bu.shape, lambda n: (0, 0)),
            ],
            out_specs=pl.BlockSpec(memory_space=pl.ANY),  # out written via DMA
            scratch_shapes=[
                pltpu.VMEM((HW, CF), x_flat.dtype),       # resident plane (~1x)
                pltpu.VMEM((2, chunk_rows, CF), x_flat.dtype),
                pltpu.SemaphoreType.DMA((2,)),
                pltpu.SemaphoreType.DMA((2,)),
            ]),
        # HBM-bound per image; keep "arbitrary" (megacore adds no HBM bandwidth).
        compiler_params=_compiler_params(need, ("arbitrary",), budget),
        cost_estimate=cost,
        input_output_aliases=({0: 0} if donate_input else {}),
    )(x2d, wdt, bd, wut, bu)
    return out.reshape(N, HW, CF)


# --------------------------------------------------------------------------- #
# Path 3: HW-tiled two-sweep fallback (planes that don't fit VMEM even once)
# --------------------------------------------------------------------------- #

def _make_pool_excite_kernel(k, inv_total):
    def kernel(x_ref, wdt_ref, bd_ref, wut_ref, bu_ref, s_ref):
        t = pl.program_id(1)

        @pl.when(t == 0)
        def _init():
            s_ref[...] = jnp.zeros_like(s_ref)

        s_ref[0] += jnp.sum(x_ref[0].astype(jnp.float32), axis=0, keepdims=True)

        @pl.when(t == pl.num_programs(1) - 1)
        def _finalize():
            s_ref[0] = _excite(s_ref[0], wdt_ref[...], bd_ref[...],
                               wut_ref[...], bu_ref[...], k, inv_total)
    return kernel


def _scale_mul_kernel(x_ref, s_ref, o_ref):
    x = x_ref[0].astype(jnp.float32)              # multiply in f32, cast at store
    o_ref[0] = (x * s_ref[0]).astype(o_ref.dtype)


def _se_two_sweep(x_flat, wdt, bd, wut, bu, k, *, hw_tile=None, budget,
                  donate_input=False):
    N, HW, CF = x_flat.shape
    C, I = wdt.shape
    itemsize = jnp.dtype(x_flat.dtype).itemsize
    target = max(1 << 20, budget // 8)            # big streaming tiles (~85%+ roofline)
    tile = hw_tile if hw_tile is not None else _pick_hw_tile(HW, CF, itemsize, target)
    assert HW % tile == 0, "hw_tile must divide the (folded) H*W extent"
    T = HW // tile
    tile_bytes = tile * CF * itemsize
    tile_f32 = tile * CF * 4
    param_bytes = (2 * C * I + C + I) * 4

    # Sweep 1: pool + excitation -> per-image (1, CF) scale row.
    pool_cost = pl.CostEstimate(
        flops=int(N * (HW * CF + 4 * C * I)),
        transcendentals=int(N * C),
        bytes_accessed=int(N * HW * CF * itemsize + N * CF * 4 + param_bytes),
    )
    scale = pl.pallas_call(
        _make_pool_excite_kernel(k, 1.0 / (HW * k)),
        out_shape=jax.ShapeDtypeStruct((N, 1, CF), jnp.float32),
        grid_spec=pltpu.PrefetchScalarGridSpec(
            num_scalar_prefetch=0,
            grid=(N, T),
            in_specs=[
                pl.BlockSpec((1, tile, CF), lambda n, t: (n, t, 0)),
                pl.BlockSpec(wdt.shape, lambda n, t: (0, 0)),
                pl.BlockSpec(bd.shape, lambda n, t: (0, 0)),
                pl.BlockSpec(wut.shape, lambda n, t: (0, 0)),
                pl.BlockSpec(bu.shape, lambda n, t: (0, 0)),
            ],
            out_specs=pl.BlockSpec((1, 1, CF), lambda n, t: (n, 0, 0)),
        ),
        compiler_params=_compiler_params(
            2 * tile_bytes + tile_f32 + 2 * param_bytes + (2 << 20),
            ("parallel", "arbitrary"), budget),
        cost_estimate=pool_cost,
    )(x_flat, wdt, bd, wut, bu)

    # Sweep 2: stream HW tiles, multiply by the per-image scale row.
    mul_cost = pl.CostEstimate(
        flops=int(N * HW * CF),
        transcendentals=0,
        bytes_accessed=int(2 * N * HW * CF * itemsize + N * CF * 4),
    )
    out = pl.pallas_call(
        _scale_mul_kernel,
        out_shape=jax.ShapeDtypeStruct((N, HW, CF), x_flat.dtype),
        grid_spec=pltpu.PrefetchScalarGridSpec(
            num_scalar_prefetch=0,
            grid=(N, T),
            in_specs=[
                pl.BlockSpec((1, tile, CF), lambda n, t: (n, t, 0)),
                pl.BlockSpec((1, 1, CF), lambda n, t: (n, 0, 0)),
            ],
            out_specs=pl.BlockSpec((1, tile, CF), lambda n, t: (n, t, 0)),
        ),
        compiler_params=_compiler_params(
            4 * tile_bytes + 2 * tile_f32 + (2 << 20),
            ("parallel", "parallel"), budget),
        cost_estimate=mul_cost,
        input_output_aliases=({0: 0} if donate_input else {}),
    )(x_flat, scale)
    return out


# --------------------------------------------------------------------------- #
# Public wrappers
# --------------------------------------------------------------------------- #

def se_block_nhwc(x_nhwc, w_down, b_down, w_up, b_up, *, force_path=None,
                  hw_tile=None, chunk_rows=None, donate_input=False):
    """SEBlock forward, NHWC layout.

    x_nhwc: (N, H, W, C); w_down: (I, C); b_down: (I,); w_up: (C, I); b_up: (C,).
    The PyTorch reference pools with kernel_size = W, so square inputs are
    required (asserted, matching the module's implicit assumption).
    """
    N, H, W, C = x_nhwc.shape
    assert H == W, "SEBlock requires square spatial inputs (H == W)"
    I = w_down.shape[0]
    assert w_down.shape == (I, C) and w_up.shape == (C, I)

    # Lane-major f32 parameter layouts (row vectors, not (X, 1) columns).
    wdt = w_down.astype(jnp.float32).T          # (C, I)
    bd = b_down.astype(jnp.float32).reshape(1, I)
    wut = w_up.astype(jnp.float32).T            # (I, C)
    bu = b_up.astype(jnp.float32).reshape(1, C)

    HW = H * W
    k = _fold_factor(C, HW)                     # lane fold: (HW, C) -> (HW/k, k*C)
    HWf, CF = HW // k, k * C
    x_flat = x_nhwc.reshape(N, HWf, CF)         # contiguous, free reshape

    itemsize = jnp.dtype(x_flat.dtype).itemsize
    budget = _vmem_budget_bytes()
    param_bytes = (2 * C * I + C + I) * 4
    plane_bytes = HWf * CF * itemsize
    per_img_fused = 4 * plane_bytes + (HWf * CF * 4 if itemsize < 4 else 0)

    path = force_path
    if path is None:
        if per_img_fused + 2 * param_bytes + (2 << 20) <= budget:
            path = "fused"
        else:
            rtile = chunk_rows if chunk_rows is not None else _pick_hw_tile(
                HWf, CF, itemsize, target_bytes=2 << 20)
            resident_need = (plane_bytes + 2 * rtile * CF * itemsize
                             + rtile * CF * 4 + 2 * param_bytes + (4 << 20))
            path = "resident" if resident_need <= budget else "two_sweep"

    if path == "fused":
        batch = _pick_batch(N, per_img_fused,
                            budget - 2 * param_bytes - (2 << 20))
        out = _se_fused(x_flat, wdt, bd, wut, bu, k, batch=batch, budget=budget,
                        donate_input=donate_input)
    elif path == "resident":
        out = _se_resident(x_flat, wdt, bd, wut, bu, k, chunk_rows=chunk_rows,
                           budget=budget, donate_input=donate_input)
    elif path == "two_sweep":
        out = _se_two_sweep(x_flat, wdt, bd, wut, bu, k, hw_tile=hw_tile,
                            budget=budget, donate_input=donate_input)
    else:
        raise ValueError(f"unknown force_path={force_path!r}")

    return out.reshape(N, H, W, C)


def se_block(x_nchw, w_down, b_down, w_up, b_up, **kwargs):
    """PyTorch-parity NCHW interface. Prefer se_block_nhwc in NHWC models to
    avoid the layout transposes (done here in XLA only for interface parity)."""
    x_nhwc = jnp.transpose(x_nchw, (0, 2, 3, 1))
    out = se_block_nhwc(x_nhwc, w_down, b_down, w_up, b_up, **kwargs)
    return jnp.transpose(out, (0, 3, 1, 2))


def se_block_ref(x, w_down, b_down, w_up, b_up):
    """Pure-JAX NCHW reference (matches the PyTorch forward)."""
    pooled = jnp.mean(x, axis=(2, 3))                       # (N, C)
    hidden = jax.nn.relu(pooled @ w_down.T + b_down)        # (N, I)
    scale = jax.nn.sigmoid(hidden @ w_up.T + b_up)          # (N, C)
    return x * scale[:, :, None, None]


# --------------------------------------------------------------------------- #
# Self-test
# --------------------------------------------------------------------------- #

if __name__ == "__main__":
    key = jax.random.PRNGKey(0)
    k_x, k_x2, k_wd, k_bd, k_wu, k_bu = jax.random.split(key, 6)

    N, C, internal = 2, 4, 8
    w_down = 0.1 * jax.random.normal(k_wd, (internal, C), dtype=jnp.float32)
    b_down = 0.1 * jax.random.normal(k_bd, (internal,), dtype=jnp.float32)
    w_up = 0.1 * jax.random.normal(k_wu, (C, internal), dtype=jnp.float32)
    b_up = 0.1 * jax.random.normal(k_bu, (C,), dtype=jnp.float32)

    # Small plane: default dispatch (fused, lane-folded, image-batched).
    x_a = jax.random.normal(k_x, (N, C, 16, 16), dtype=jnp.float32)
    ref_a = se_block_ref(x_a, w_down, b_down, w_up, b_up)
    out_a = se_block(x_a, w_down, b_down, w_up, b_up)
    jax.block_until_ready(out_a)
    assert jnp.allclose(out_a, ref_a, atol=1e-5, rtol=1e-5), "fused path mismatch"

    # bf16 input through the same fused path (f32 multiply, bf16 store).
    x_bf = x_a.astype(jnp.bfloat16)
    out_bf = se_block(x_bf, w_down, b_down, w_up, b_up)
    jax.block_until_ready(out_bf)
    ref_bf = se_block_ref(x_bf.astype(jnp.float32), w_down, b_down, w_up, b_up)
    assert jnp.allclose(out_bf.astype(jnp.float32), ref_bf, atol=5e-2, rtol=5e-2), \
        "fused bf16 path mismatch"

    # Larger plane: exercise the manual resident single-read pipeline (forced
    # with small chunks so the DMA windows / drains run multiple steps) and the
    # two-sweep fallback.
    x_b = jax.random.normal(k_x2, (N, C, 64, 64), dtype=jnp.float32)
    ref_b = se_block_ref(x_b, w_down, b_down, w_up, b_up)

    out_res = se_block(x_b, w_down, b_down, w_up, b_up,
                       force_path="resident", chunk_rows=32)
    jax.block_until_ready(out_res)
    assert jnp.allclose(out_res, ref_b, atol=1e-5, rtol=1e-5), "resident path mismatch"

    out_ts = se_block(x_b, w_down, b_down, w_up, b_up,
                      force_path="two_sweep", hw_tile=32)
    jax.block_until_ready(out_ts)
    assert jnp.allclose(out_ts, ref_b, atol=1e-5, rtol=1e-5), "two-sweep path mismatch"

    print("KERNEL_OK")
</pallas_src>

<mosaic_0001>
module attributes {stable_mosaic.version = 11 : i64} {
  func.func @kernel(%arg0: i32, %arg1: memref<2x8x128xf32, #tpu.memory_space<vmem>>, %arg2: memref<4x8xf32, #tpu.memory_space<vmem>>, %arg3: memref<1x8xf32, #tpu.memory_space<vmem>>, %arg4: memref<8x4xf32, #tpu.memory_space<vmem>>, %arg5: memref<1x4xf32, #tpu.memory_space<vmem>>, %arg6: memref<2x8x128xf32, #tpu.memory_space<vmem>>) attributes {dimension_semantics = [#tpu.dimension_semantics<parallel>], iteration_bounds = array<i64: 1>, scalar_prefetch = 0 : i64, scratch_operands = 0 : i64, tpu.core_type = #tpu.core_type<tc>, window_params = [{transform_indices = @transform_0, window_bounds = array<i64: 2, 8, 128>}, {pipeline_mode = #tpu.pipeline_mode<synchronous>, transform_indices = @transform_1, window_bounds = array<i64: 4, 8>}, {pipeline_mode = #tpu.pipeline_mode<synchronous>, transform_indices = @transform_2, window_bounds = array<i64: 1, 8>}, {pipeline_mode = #tpu.pipeline_mode<synchronous>, transform_indices = @transform_3, window_bounds = array<i64: 8, 4>}, {pipeline_mode = #tpu.pipeline_mode<synchronous>, transform_indices = @transform_4, window_bounds = array<i64: 1, 4>}, {transform_indices = @transform_5, window_bounds = array<i64: 2, 8, 128>}]} {
    %c0 = arith.constant 0 : index
    %c0_0 = arith.constant 0 : index
    %c0_1 = arith.constant 0 : index
    %0 = vector.load %arg1[%c0, %c0_0, %c0_1] : memref<2x8x128xf32, #tpu.memory_space<vmem>>, vector<2x8x128xf32>
    %cst = arith.constant dense<0.000000e+00> : vector<2x128xf32>
    %1 = vector.multi_reduction <add>, %0, %cst [1] : vector<2x8x128xf32> to vector<2x128xf32>
    %c0_2 = arith.constant 0 : index
    %c0_3 = arith.constant 0 : index
    %2 = vector.load %arg2[%c0_2, %c0_3] : memref<4x8xf32, #tpu.memory_space<vmem>>, vector<4x8xf32>
    %c0_4 = arith.constant 0 : index
    %c0_5 = arith.constant 0 : index
    %3 = vector.load %arg3[%c0_4, %c0_5] : memref<1x8xf32, #tpu.memory_space<vmem>>, vector<1x8xf32>
    %c0_6 = arith.constant 0 : index
    %c0_7 = arith.constant 0 : index
    %4 = vector.load %arg4[%c0_6, %c0_7] : memref<8x4xf32, #tpu.memory_space<vmem>>, vector<8x4xf32>
    %c0_8 = arith.constant 0 : index
    %c0_9 = arith.constant 0 : index
    %5 = vector.load %arg5[%c0_8, %c0_9] : memref<1x4xf32, #tpu.memory_space<vmem>>, vector<1x4xf32>
    %6 = vector.extract_strided_slice %1 {offsets = [0, 0], sizes = [2, 4], strides = [1, 1]} : vector<2x128xf32> to vector<2x4xf32>
    %7 = vector.extract_strided_slice %1 {offsets = [0, 4], sizes = [2, 4], strides = [1, 1]} : vector<2x128xf32> to vector<2x4xf32>
    %8 = arith.addf %6, %7 : vector<2x4xf32>
    %9 = vector.extract_strided_slice %1 {offsets = [0, 8], sizes = [2, 4], strides = [1, 1]} : vector<2x128xf32> to vector<2x4xf32>
    %10 = arith.addf %8, %9 : vector<2x4xf32>
    %11 = vector.extract_strided_slice %1 {offsets = [0, 12], sizes = [2, 4], strides = [1, 1]} : vector<2x128xf32> to vector<2x4xf32>
    %12 = arith.addf %10, %11 : vector<2x4xf32>
    %13 = vector.extract_strided_slice %1 {offsets = [0, 16], sizes = [2, 4], strides = [1, 1]} : vector<2x128xf32> to vector<2x4xf32>
    %14 = arith.addf %12, %13 : vector<2x4xf32>
    %15 = vector.extract_strided_slice %1 {offsets = [0, 20], sizes = [2, 4], strides = [1, 1]} : vector<2x128xf32> to vector<2x4xf32>
    %16 = arith.addf %14, %15 : vector<2x4xf32>
    %17 = vector.extract_strided_slice %1 {offsets = [0, 24], sizes = [2, 4], strides = [1, 1]} : vector<2x128xf32> to vector<2x4xf32>
    %18 = arith.addf %16, %17 : vector<2x4xf32>
    %19 = vector.extract_strided_slice %1 {offsets = [0, 28], sizes = [2, 4], strides = [1, 1]} : vector<2x128xf32> to vector<2x4xf32>
    %20 = arith.addf %18, %19 : vector<2x4xf32>
    %21 = vector.extract_strided_slice %1 {offsets = [0, 32], sizes = [2, 4], strides = [1, 1]} : vector<2x128xf32> to vector<2x4xf32>
    %22 = arith.addf %20, %21 : vector<2x4xf32>
    %23 = vector.extract_strided_slice %1 {offsets = [0, 36], sizes = [2, 4], strides = [1, 1]} : vector<2x128xf32> to vector<2x4xf32>
    %24 = arith.addf %22, %23 : vector<2x4xf32>
    %25 = vector.extract_strided_slice %1 {offsets = [0, 40], sizes = [2, 4], strides = [1, 1]} : vector<2x128xf32> to vector<2x4xf32>
    %26 = arith.addf %24, %25 : vector<2x4xf32>
    %27 = vector.extract_strided_slice %1 {offsets = [0, 44], sizes = [2, 4], strides = [1, 1]} : vector<2x128xf32> to vector<2x4xf32>
    %28 = arith.addf %26, %27 : vector<2x4xf32>
    %29 = vector.extract_strided_slice %1 {offsets = [0, 48], sizes = [2, 4], strides = [1, 1]} : vector<2x128xf32> to vector<2x4xf32>
    %30 = arith.addf %28, %29 : vector<2x4xf32>
    %31 = vector.extract_strided_slice %1 {offsets = [0, 52], sizes = [2, 4], strides = [1, 1]} : vector<2x128xf32> to vector<2x4xf32>
    %32 = arith.addf %30, %31 : vector<2x4xf32>
    %33 = vector.extract_strided_slice %1 {offsets = [0, 56], sizes = [2, 4], strides = [1, 1]} : vector<2x128xf32> to vector<2x4xf32>
    %34 = arith.addf %32, %33 : vector<2x4xf32>
    %35 = vector.extract_strided_slice %1 {offsets = [0, 60], sizes = [2, 4], strides = [1, 1]} : vector<2x128xf32> to vector<2x4xf32>
    %36 = arith.addf %34, %35 : vector<2x4xf32>
    %37 = vector.extract_strided_slice %1 {offsets = [0, 64], sizes = [2, 4], strides = [1, 1]} : vector<2x128xf32> to vector<2x4xf32>
    %38 = arith.addf %36, %37 : vector<2x4xf32>
    %39 = vector.extract_strided_slice %1 {offsets = [0, 68], sizes = [2, 4], strides = [1, 1]} : vector<2x128xf32> to vector<2x4xf32>
    %40 = arith.addf %38, %39 : vector<2x4xf32>
    %41 = vector.extract_strided_slice %1 {offsets = [0, 72], sizes = [2, 4], strides = [1, 1]} : vector<2x128xf32> to vector<2x4xf32>
    %42 = arith.addf %40, %41 : vector<2x4xf32>
    %43 = vector.extract_strided_slice %1 {offsets = [0, 76], sizes = [2, 4], strides = [1, 1]} : vector<2x128xf32> to vector<2x4xf32>
    %44 = arith.addf %42, %43 : vector<2x4xf32>
    %45 = vector.extract_strided_slice %1 {offsets = [0, 80], sizes = [2, 4], strides = [1, 1]} : vector<2x128xf32> to vector<2x4xf32>
    %46 = arith.addf %44, %45 : vector<2x4xf32>
    %47 = vector.extract_strided_slice %1 {offsets = [0, 84], sizes = [2, 4], strides = [1, 1]} : vector<2x128xf32> to vector<2x4xf32>
    %48 = arith.addf %46, %47 : vector<2x4xf32>
    %49 = vector.extract_strided_slice %1 {offsets = [0, 88], sizes = [2, 4], strides = [1, 1]} : vector<2x128xf32> to vector<2x4xf32>
    %50 = arith.addf %48, %49 : vector<2x4xf32>
    %51 = vector.extract_strided_slice %1 {offsets = [0, 92], sizes = [2, 4], strides = [1, 1]} : vector<2x128xf32> to vector<2x4xf32>
    %52 = arith.addf %50, %51 : vector<2x4xf32>
    %53 = vector.extract_strided_slice %1 {offsets = [0, 96], sizes = [2, 4], strides = [1, 1]} : vector<2x128xf32> to vector<2x4xf32>
    %54 = arith.addf %52, %53 : vector<2x4xf32>
    %55 = vector.extract_strided_slice %1 {offsets = [0, 100], sizes = [2, 4], strides = [1, 1]} : vector<2x128xf32> to vector<2x4xf32>
    %56 = arith.addf %54, %55 : vector<2x4xf32>
    %57 = vector.extract_strided_slice %1 {offsets = [0, 104], sizes = [2, 4], strides = [1, 1]} : vector<2x128xf32> to vector<2x4xf32>
    %58 = arith.addf %56, %57 : vector<2x4xf32>
    %59 = vector.extract_strided_slice %1 {offsets = [0, 108], sizes = [2, 4], strides = [1, 1]} : vector<2x128xf32> to vector<2x4xf32>
    %60 = arith.addf %58, %59 : vector<2x4xf32>
    %61 = vector.extract_strided_slice %1 {offsets = [0, 112], sizes = [2, 4], strides = [1, 1]} : vector<2x128xf32> to vector<2x4xf32>
    %62 = arith.addf %60, %61 : vector<2x4xf32>
    %63 = vector.extract_strided_slice %1 {offsets = [0, 116], sizes = [2, 4], strides = [1, 1]} : vector<2x128xf32> to vector<2x4xf32>
    %64 = arith.addf %62, %63 : vector<2x4xf32>
    %65 = vector.extract_strided_slice %1 {offsets = [0, 120], sizes = [2, 4], strides = [1, 1]} : vector<2x128xf32> to vector<2x4xf32>
    %66 = arith.addf %64, %65 : vector<2x4xf32>
    %67 = vector.extract_strided_slice %1 {offsets = [0, 124], sizes = [2, 4], strides = [1, 1]} : vector<2x128xf32> to vector<2x4xf32>
    %68 = arith.addf %66, %67 : vector<2x4xf32>
    %cst_10 = arith.constant 3.906250e-03 : f32
    %69 = vector.broadcast %cst_10 : f32 to vector<2x4xf32>
    %70 = arith.mulf %68, %69 : vector<2x4xf32>
    %cst_11 = arith.constant dense<0.000000e+00> : vector<2x8xf32>
    %71 = tpu.matmul %70, %2, %cst_11 {dimension_numbers = #tpu.dot_dimension_numbers<[1], [0], [0], [1], [0, 0, 1, 1], [], []>} : vector<2x4xf32>, vector<4x8xf32>, vector<2x8xf32> -> vector<2x8xf32>
    %72 = vector.broadcast %3 : vector<1x8xf32> to vector<2x8xf32>
    %73 = arith.addf %71, %72 : vector<2x8xf32>
    %cst_12 = arith.constant 0.000000e+00 : f32
    %74 = vector.broadcast %cst_12 : f32 to vector<2x8xf32>
    %75 = arith.maximumf %73, %74 : vector<2x8xf32>
    %cst_13 = arith.constant dense<0.000000e+00> : vector<2x4xf32>
    %76 = tpu.matmul %75, %4, %cst_13 {dimension_numbers = #tpu.dot_dimension_numbers<[1], [0], [0], [1], [0, 0, 1, 1], [], []>} : vector<2x8xf32>, vector<8x4xf32>, vector<2x4xf32> -> vector<2x4xf32>
    %77 = vector.broadcast %5 : vector<1x4xf32> to vector<2x4xf32>
    %78 = arith.addf %76, %77 : vector<2x4xf32>
    %79 = arith.negf %78 : vector<2x4xf32>
    %80 = math.exp %79 : vector<2x4xf32>
    %cst_14 = arith.constant 1.000000e+00 : f32
    %81 = vector.broadcast %cst_14 : f32 to vector<2x4xf32>
    %82 = arith.addf %81, %80 : vector<2x4xf32>
    %83 = arith.divf %81, %82 : vector<2x4xf32>
    %84 = tpu.concatenate %83, %83, %83, %83, %83, %83, %83, %83, %83, %83, %83, %83, %83, %83, %83, %83 in 1 : vector<2x4xf32>, vector<2x4xf32>, vector<2x4xf32>, vector<2x4xf32>, vector<2x4xf32>, vector<2x4xf32>, vector<2x4xf32>, vector<2x4xf32>, vector<2x4xf32>, vector<2x4xf32>, vector<2x4xf32>, vector<2x4xf32>, vector<2x4xf32>, vector<2x4xf32>, vector<2x4xf32>, vector<2x4xf32> -> vector<2x64xf32>
    %85 = tpu.concatenate %83, %83, %83, %83, %83, %83, %83, %83, %83, %83, %83, %83, %83, %83, %83, %83 in 1 : vector<2x4xf32>, vector<2x4xf32>, vector<2x4xf32>, vector<2x4xf32>, vector<2x4xf32>, vector<2x4xf32>, vector<2x4xf32>, vector<2x4xf32>, vector<2x4xf32>, vector<2x4xf32>, vector<2x4xf32>, vector<2x4xf32>, vector<2x4xf32>, vector<2x4xf32>, vector<2x4xf32>, vector<2x4xf32> -> vector<2x64xf32>
    %86 = tpu.concatenate %84, %85 in 1 : vector<2x64xf32>, vector<2x64xf32> -> vector<2x128xf32>
    %87 = vector.shape_cast %86 : vector<2x128xf32> to vector<2x1x128xf32>
    %88 = vector.broadcast %87 : vector<2x1x128xf32> to vector<2x8x128xf32>
    %89 = arith.mulf %0, %88 : vector<2x8x128xf32>
    %c0_15 = arith.constant 0 : index
    %c0_16 = arith.constant 0 : index
    %c0_17 = arith.constant 0 : index
    %90 = vector.load %arg6[%c0_15, %c0_16, %c0_17] : memref<2x8x128xf32, #tpu.memory_space<vmem>>, vector<2x8x128xf32>
    tpu.vector_store %arg6[%c0_15, %c0_16, %c0_17], %89 {strides = array<i32>} : memref<2x8x128xf32, #tpu.memory_space<vmem>>, vector<2x8x128xf32>,
    return
  }
  func.func @transform_0(%arg0: i32) -> (i32, i32, i32) {
    %c0_i32 = arith.constant 0 : i32
    %c0_i32_0 = arith.constant 0 : i32
    %c0_i32_1 = arith.constant 0 : i32
    return %arg0, %c0_i32, %c0_i32_0 : i32, i32, i32
  }
  func.func @transform_1(%arg0: i32) -> (i32, i32) {
    %c0_i32 = arith.constant 0 : i32
    %c0_i32_0 = arith.constant 0 : i32
    %c0_i32_1 = arith.constant 0 : i32
    return %c0_i32, %c0_i32_0 : i32, i32
  }
  func.func @transform_2(%arg0: i32) -> (i32, i32) {
    %c0_i32 = arith.constant 0 : i32
    %c0_i32_0 = arith.constant 0 : i32
    %c0_i32_1 = arith.constant 0 : i32
    return %c0_i32, %c0_i32_0 : i32, i32
  }
  func.func @transform_3(%arg0: i32) -> (i32, i32) {
    %c0_i32 = arith.constant 0 : i32
    %c0_i32_0 = arith.constant 0 : i32
    %c0_i32_1 = arith.constant 0 : i32
    return %c0_i32, %c0_i32_0 : i32, i32
  }
  func.func @transform_4(%arg0: i32) -> (i32, i32) {
    %c0_i32 = arith.constant 0 : i32
    %c0_i32_0 = arith.constant 0 : i32
    %c0_i32_1 = arith.constant 0 : i32
    return %c0_i32, %c0_i32_0 : i32, i32
  }
  func.func @transform_5(%arg0: i32) -> (i32, i32, i32) {
    %c0_i32 = arith.constant 0 : i32
    %c0_i32_0 = arith.constant 0 : i32
    %c0_i32_1 = arith.constant 0 : i32
    return %arg0, %c0_i32, %c0_i32_0 : i32, i32, i32
  }
}

</mosaic_0001>

<bundles_post_ra>
// kernel: tpu_custom_call.1
= control target key start
LH: loop header
LB: loop body
LE: loop exit
PB: predicated region body
PF: predicated region fallthrough
CT: control target
= control target key end

     0   :  { %10 = vsyncpa [#allocation3], 0  ;;  %s940_s0 = inlined_call_operand.hbm [shape: f32[2,8,128], index: 0, kind: input, shape index: {}]   ;;  %s941_s1 = inlined_call_operand.vmem [shape: f32[4,8], index: 1, kind: input, shape index: {}]   ;;  %s942_s2 = inlined_call_operand.vmem [shape: f32[1,8], index: 2, kind: input, shape index: {}]   ;;  %s943_s3 = inlined_call_operand.vmem [shape: f32[8,4], index: 3, kind: input, shape index: {}]   ;;  %s944_s4 = inlined_call_operand.vmem [shape: f32[1,4], index: 4, kind: input, shape index: {}]   ;;  %s945_s5 = inlined_call_operand.hbm [shape: f32[2,8,128], index: 5, kind: output, shape index: {}]  }
   0x1   :  { %11 = vsyncpa [#allocation4], 0  ;;  %s719_s18 = smov [#allocation2]  }
   0x2   :  { %s17_s19 = sshll.u32 %s719_s18, 4  ;;  %s18_s19 = int_to_ptr.vmem [resolvable:$true] %s17_s19 }
   0x3   :  { %s683_s20 = scalar_lea.vmem %s18_s19, 256  ;;  %p688_p1 = scmp.lt.s32.totalorder %s18_s19, %s18_s19 }
   0x4   :  { %p684_p0 = scmp.ne.s32.totalorder %s18_s19, %s683_s20  ;;  %p689_p2 = scmp.lt.s32.totalorder %s683_s20, %s683_s20 }
   0x6   :  { %p690_p3 = por %p689_p2, %p688_p1 }
   0x8   :  { %p691_p4 = pnand %p690_p3, %p684_p0 }
   0xa   :  { %694 = shalt.err (!%p691_p4)
}
   0xb   :  { %s720_s21 = smov 128   ;;  %s721_s22 = smov 8  }
   0xc   :  { %23 = dma.hbm_to_vmem [thread:$0]  %s940_s0, 256, %s18_s19, [#allocation3], %s720_s21, %s720_s21, %s721_s22  }
   0xd   :  { %715 = dma.done.wait [#allocation3], 256  }
   0xe   :  { %716 = vsyncadd [#allocation3], 4294967040  ;;  %v792_v0 = vld [vmem:[#allocation2] sm:$0xff]  ;;  %v794_v1 = vld [vmem:[#allocation2 + $0x8] sm:$0xff]  ;;  %s722_s0 = smov 120   ;;  %s723_s25 = smov 124  }
   0xf   :  { %v37_v2 = vrot.slane %v792_v0, 4  ;;  %v43_v3 = vrot.slane %v794_v1, 4  ;;  %s724_s26 = smov 116   ;;  %s725_s27 = smov 112   ;;  %v49_v14 = vld [vmem:[%s941_s1] sm:$0xf] }
  0x10   :  { %s726_s28 = smov 108   ;;  %s727_s29 = smov 104   ;;  %vm319_vm0 = vcmask 1043456   ;;  %v751_v15 = vmov 0.0   ;;  %vm752_vm1 = vmmov 0   ;;  %vm314_vm2 = vcmask 1041409  }
  0x11   :  { %v38_v4 = vadd.f32 %v37_v2, %v792_v0  ;;  %v44_v5 = vadd.f32 %v43_v3, %v794_v1  ;;  %s728_s30 = smov 100   ;;  %s729_s6 = smov 96   ;;  %624 = vmatprep.subr.mxu0 %v751_v15  ;;  %626 = vmatprep.mubr.msk.f32.mxu0 %vm752_vm1, %v751_v15  ;;  %vm316_vm3 = vcmask 31744   ;;  %vm400_vm4 = vcmask 64512  }
  0x12   :  { %s730_s7 = smov 92   ;;  %s731_s8 = smov 88   ;;  %625 = vmatpush3.msk.msra.mxu0 %vm319_vm0, %v49_v14  ;;  %629 = vmatprep.subr.mxu1 %v751_v15  ;;  %vm528_vm5 = vcmask 97280   ;;  %vm530_vm6 = vcmask 130048   ;;  %vm532_vm7 = vcmask 162816   ;;  %vm534_vm8 = vcmask 195584  }
  0x13   :  { %v39_v6 = vrot.slane %v38_v4, 2  ;;  %v45_v7 = vrot.slane %v44_v5, 2  ;;  %s732_s9 = smov 84   ;;  %s733_s10 = smov 80   ;;  %631 = vmatprep.mubr.msk.f32.mxu1 %vm752_vm1, %v751_v15  ;;  %vm536_vm9 = vcmask 228352   ;;  %vm538_vm10 = vcmask 261120  }
  0x14   :  { %s734_s11 = smov 76   ;;  %s735_s12 = smov 72   ;;  %vm540_vm11 = vcmask 293888   ;;  %vm542_vm12 = vcmask 326656   ;;  %vm544_vm13 = vcmask 359424   ;;  %vm546_vm14 = vcmask 392192  }
  0x15   :  { %v40_v8 = vadd.f32 %v39_v6, %v38_v4  ;;  %v46_v9 = vadd.f32 %v45_v7, %v44_v5  ;;  %s736_s13 = smov 68   ;;  %s737_s14 = smov 64   ;;  %vm548_vm15 = vcmask 424960   ;;  %vm550_vm0 = vcmask 457728  }
  0x16   :  { %s738_s15 = smov 60   ;;  %s739_s16 = smov 56   ;;  %vm552_vm1 = vcmask 490496  }
  0x17   :  { %v41_v10 = vrot.slane %v40_v8, 1  ;;  %v47_v11 = vrot.slane %v46_v9, 1  ;;  %s740_s17 = smov 52   ;;  %s741_s18 = smov 48  }
  0x18   :  { %s742_s19 = smov 44   ;;  %s743_s20 = smov 40  }
  0x19   :  { %v800_v12 = vadd.f32 %v47_v11, %v46_v9  ;;  %v802_v13 = vadd.f32 %v41_v10, %v40_v8  ;;  %s744_s23 = smov 36   ;;  %s745_s24 = smov 32  }
  0x1a   :  { %s753_s1 = smov 4  }
  0x1b   :  { %65 = vrot.lane.b32.xlu1 %v800_v12, %s722_s0  ;;  %57 = vrot.lane.b32.xlu0 %v800_v12, %s723_s25 }
  0x1f   :  { %63 = vrot.lane.b32.xlu1 %v802_v13, %s722_s0  ;;  %55 = vrot.lane.b32.xlu0 %v802_v13, %s723_s25  ;;  %s746_s0 = smov 28   ;;  %s747_s25 = smov 24  }
  0x23   :  { %71 = vrot.lane.b32.xlu1 %v802_v13, %s724_s26  ;;  %73 = vrot.lane.b32.xlu0 %v800_v12, %s724_s26  ;;  %s748_s26 = smov 20  }
  0x27   :  { %79 = vrot.lane.b32.xlu1 %v802_v13, %s725_s27  ;;  %81 = vrot.lane.b32.xlu0 %v800_v12, %s725_s27  ;;  %s749_s27 = smov 16  }
  0x2b   :  { %87 = vrot.lane.b32.xlu1 %v802_v13, %s726_s28  ;;  %89 = vrot.lane.b32.xlu0 %v800_v12, %s726_s28 }
  0x2f   :  { %95 = vrot.lane.b32.xlu1 %v802_v13, %s727_s29  ;;  %97 = vrot.lane.b32.xlu0 %v800_v12, %s727_s29 }
  0x33   :  { %103 = vrot.lane.b32.xlu1 %v802_v13, %s728_s30  ;;  %105 = vrot.lane.b32.xlu0 %v800_v12, %s728_s30  ;;  %s750_s30 = smov 12  }
  0x37   :  { %111 = vrot.lane.b32.xlu1 %v802_v13, %s729_s6  ;;  %113 = vrot.lane.b32.xlu0 %v800_v12, %s729_s6 }
  0x3b   :  { %119 = vrot.lane.b32.xlu1 %v802_v13, %s730_s7  ;;  %121 = vrot.lane.b32.xlu0 %v800_v12, %s730_s7 }
  0x3f   :  { %127 = vrot.lane.b32.xlu1 %v802_v13, %s731_s8  ;;  %129 = vrot.lane.b32.xlu0 %v800_v12, %s731_s8 }
  0x43   :  { %135 = vrot.lane.b32.xlu1 %v802_v13, %s732_s9  ;;  %137 = vrot.lane.b32.xlu0 %v800_v12, %s732_s9 }
  0x47   :  { %143 = vrot.lane.b32.xlu1 %v802_v13, %s733_s10  ;;  %145 = vrot.lane.b32.xlu0 %v800_v12, %s733_s10 }
  0x4b   :  { %151 = vrot.lane.b32.xlu1 %v802_v13, %s734_s11  ;;  %153 = vrot.lane.b32.xlu0 %v800_v12, %s734_s11 }
  0x4f   :  { %159 = vrot.lane.b32.xlu1 %v802_v13, %s735_s12  ;;  %161 = vrot.lane.b32.xlu0 %v800_v12, %s735_s12 }
  0x53   :  { %167 = vrot.lane.b32.xlu1 %v802_v13, %s736_s13  ;;  %169 = vrot.lane.b32.xlu0 %v800_v12, %s736_s13 }
  0x57   :  { %175 = vrot.lane.b32.xlu1 %v802_v13, %s737_s14  ;;  %177 = vrot.lane.b32.xlu0 %v800_v12, %s737_s14 }
  0x5b   :  { %183 = vrot.lane.b32.xlu1 %v802_v13, %s738_s15  ;;  %185 = vrot.lane.b32.xlu0 %v800_v12, %s738_s15 }
  0x5f   :  { %191 = vrot.lane.b32.xlu1 %v802_v13, %s739_s16  ;;  %193 = vrot.lane.b32.xlu0 %v800_v12, %s739_s16 }
  0x63   :  { %199 = vrot.lane.b32.xlu1 %v802_v13, %s740_s17  ;;  %201 = vrot.lane.b32.xlu0 %v800_v12, %s740_s17 }
  0x67   :  { %207 = vrot.lane.b32.xlu1 %v802_v13, %s741_s18  ;;  %209 = vrot.lane.b32.xlu0 %v800_v12, %s741_s18 }
  0x6b   :  { %215 = vrot.lane.b32.xlu1 %v802_v13, %s742_s19  ;;  %217 = vrot.lane.b32.xlu0 %v800_v12, %s742_s19 }
  0x6f   :  { %223 = vrot.lane.b32.xlu1 %v802_v13, %s743_s20  ;;  %225 = vrot.lane.b32.xlu0 %v800_v12, %s743_s20 }
  0x73   :  { %231 = vrot.lane.b32.xlu1 %v802_v13, %s744_s23  ;;  %233 = vrot.lane.b32.xlu0 %v800_v12, %s744_s23 }
  0x77   :  { %239 = vrot.lane.b32.xlu1 %v802_v13, %s745_s24  ;;  %241 = vrot.lane.b32.xlu0 %v800_v12, %s745_s24 }
  0x7b   :  { %247 = vrot.lane.b32.xlu1 %v802_v13, %s746_s0  ;;  %249 = vrot.lane.b32.xlu0 %v800_v12, %s746_s0 }
  0x7f   :  { %255 = vrot.lane.b32.xlu1 %v802_v13, %s747_s25  ;;  %257 = vrot.lane.b32.xlu0 %v800_v12, %s747_s25 }
  0x83   :  { %263 = vrot.lane.b32.xlu1 %v802_v13, %s748_s26  ;;  %265 = vrot.lane.b32.xlu0 %v800_v12, %s748_s26 }
  0x87   :  { %271 = vrot.lane.b32.xlu1 %v802_v13, %s749_s27  ;;  %273 = vrot.lane.b32.xlu0 %v800_v12, %s749_s27 }
  0x8b   :  { %279 = vrot.lane.b32.xlu1 %v802_v13, %s750_s30  ;;  %281 = vrot.lane.b32.xlu0 %v800_v12, %s750_s30 }
  0x8d   :  { %v66_v16 = vpop.permute.xlu1 %65  ;;  %v58_v17 = vpop.permute.xlu0 %57 }
  0x8e   :  { %v62_v47 = vadd.f32 %v58_v17, %v800_v12 }
  0x8f   :  { %287 = vrot.lane.b32.xlu1 %v802_v13, %s721_s22  ;;  %289 = vrot.lane.b32.xlu0 %v800_v12, %s721_s22 }
  0x90   :  { %v70_v51 = vadd.f32 %v66_v16, %v62_v47 }
  0x91   :  { %v64_v18 = vpop.permute.xlu1 %63  ;;  %v56_v19 = vpop.permute.xlu0 %55 }
  0x92   :  { %v61_v46 = vadd.f32 %v56_v19, %v802_v13 }
  0x93   :  { %295 = vrot.lane.b32.xlu1 %v802_v13, %s753_s1  ;;  %297 = vrot.lane.b32.xlu0 %v800_v12, %s753_s1 }
  0x94   :  { %v69_v50 = vadd.f32 %v64_v18, %v61_v46 }
  0x95   :  { %v72_v20 = vpop.permute.xlu1 %71  ;;  %v74_v21 = vpop.permute.xlu0 %73 }
  0x96   :  { %v77_v54 = vadd.f32 %v72_v20, %v69_v50  ;;  %v78_v55 = vadd.f32 %v74_v21, %v70_v51 }
  0x99   :  { %v80_v22 = vpop.permute.xlu1 %79  ;;  %v82_v23 = vpop.permute.xlu0 %81 }
  0x9a   :  { %v85_v56 = vadd.f32 %v80_v22, %v77_v54  ;;  %v86_v57 = vadd.f32 %v82_v23, %v78_v55 }
  0x9d   :  { %v88_v24 = vpop.permute.xlu1 %87  ;;  %v90_v25 = vpop.permute.xlu0 %89 }
  0x9e   :  { %v93_v60 = vadd.f32 %v88_v24, %v85_v56  ;;  %v94_v61 = vadd.f32 %v90_v25, %v86_v57 }
  0xa1   :  { %v96_v26 = vpop.permute.xlu1 %95  ;;  %v98_v27 = vpop.permute.xlu0 %97 }
  0xa2   :  { %v101_v62 = vadd.f32 %v96_v26, %v93_v60  ;;  %v102_v63 = vadd.f32 %v98_v27, %v94_v61 }
  0xa5   :  { %v104_v28 = vpop.permute.xlu1 %103  ;;  %v106_v29 = vpop.permute.xlu0 %105 }
  0xa6   :  { %v109_v4 = vadd.f32 %v104_v28, %v101_v62  ;;  %v110_v5 = vadd.f32 %v106_v29, %v102_v63 }
  0xa9   :  { %v112_v30 = vpop.permute.xlu1 %111  ;;  %v114_v31 = vpop.permute.xlu0 %113 }
  0xaa   :  { %v117_v6 = vadd.f32 %v112_v30, %v109_v4  ;;  %v118_v7 = vadd.f32 %v114_v31, %v110_v5 }
  0xad   :  { %v120_v32 = vpop.permute.xlu1 %119  ;;  %v122_v33 = vpop.permute.xlu0 %121 }
  0xae   :  { %v125_v10 = vadd.f32 %v120_v32, %v117_v6  ;;  %v126_v11 = vadd.f32 %v122_v33, %v118_v7 }
  0xb1   :  { %v128_v34 = vpop.permute.xlu1 %127  ;;  %v130_v35 = vpop.permute.xlu0 %129 }
  0xb2   :  { %v133_v12 = vadd.f32 %v128_v34, %v125_v10  ;;  %v134_v13 = vadd.f32 %v130_v35, %v126_v11 }
  0xb5   :  { %v136_v36 = vpop.permute.xlu1 %135  ;;  %v138_v37 = vpop.permute.xlu0 %137 }
  0xb6   :  { %v141_v16 = vadd.f32 %v136_v36, %v133_v12  ;;  %v142_v17 = vadd.f32 %v138_v37, %v134_v13 }
  0xb9   :  { %v144_v38 = vpop.permute.xlu1 %143  ;;  %v146_v39 = vpop.permute.xlu0 %145 }
  0xba   :  { %v149_v18 = vadd.f32 %v144_v38, %v141_v16  ;;  %v150_v19 = vadd.f32 %v146_v39, %v142_v17 }
  0xbd   :  { %v152_v40 = vpop.permute.xlu1 %151  ;;  %v154_v41 = vpop.permute.xlu0 %153 }
  0xbe   :  { %v157_v22 = vadd.f32 %v152_v40, %v149_v18  ;;  %v158_v23 = vadd.f32 %v154_v41, %v150_v19 }
  0xc1   :  { %v160_v42 = vpop.permute.xlu1 %159  ;;  %v162_v43 = vpop.permute.xlu0 %161 }
  0xc2   :  { %v165_v24 = vadd.f32 %v160_v42, %v157_v22  ;;  %v166_v25 = vadd.f32 %v162_v43, %v158_v23 }
  0xc5   :  { %v168_v44 = vpop.permute.xlu1 %167  ;;  %v170_v45 = vpop.permute.xlu0 %169 }
  0xc6   :  { %v173_v28 = vadd.f32 %v168_v44, %v165_v24  ;;  %v174_v29 = vadd.f32 %v170_v45, %v166_v25 }
  0xc9   :  { %v176_v48 = vpop.permute.xlu1 %175  ;;  %v178_v49 = vpop.permute.xlu0 %177 }
  0xca   :  { %v181_v30 = vadd.f32 %v176_v48, %v173_v28  ;;  %v182_v31 = vadd.f32 %v178_v49, %v174_v29 }
  0xcd   :  { %v184_v52 = vpop.permute.xlu1 %183  ;;  %v186_v53 = vpop.permute.xlu0 %185 }
  0xce   :  { %v189_v34 = vadd.f32 %v184_v52, %v181_v30  ;;  %v190_v35 = vadd.f32 %v186_v53, %v182_v31 }
  0xd1   :  { %v192_v58 = vpop.permute.xlu1 %191  ;;  %v194_v59 = vpop.permute.xlu0 %193 }
  0xd2   :  { %v197_v36 = vadd.f32 %v192_v58, %v189_v34  ;;  %v198_v37 = vadd.f32 %v194_v59, %v190_v35 }
  0xd5   :  { %v200_v2 = vpop.permute.xlu1 %199  ;;  %v202_v3 = vpop.permute.xlu0 %201 }
  0xd6   :  { %v205_v46 = vadd.f32 %v200_v2, %v197_v36  ;;  %v206_v47 = vadd.f32 %v202_v3, %v198_v37 }
  0xd9   :  { %v208_v8 = vpop.permute.xlu1 %207  ;;  %v210_v9 = vpop.permute.xlu0 %209 }
  0xda   :  { %v213_v40 = vadd.f32 %v208_v8, %v205_v46  ;;  %v214_v41 = vadd.f32 %v210_v9, %v206_v47 }
  0xdd   :  { %v216_v14 = vpop.permute.xlu1 %215  ;;  %v218_v15 = vpop.permute.xlu0 %217 }
  0xde   :  { %v221_v50 = vadd.f32 %v216_v14, %v213_v40  ;;  %v222_v51 = vadd.f32 %v218_v15, %v214_v41 }
  0xe1   :  { %v224_v20 = vpop.permute.xlu1 %223  ;;  %v226_v21 = vpop.permute.xlu0 %225 }
  0xe2   :  { %v229_v44 = vadd.f32 %v224_v20, %v221_v50  ;;  %v230_v45 = vadd.f32 %v226_v21, %v222_v51  ;;  %v51_v20 = vld [vmem:[%s943_s3] sm:$0xff] }
  0xe3   :  { %630 = vmatpush3.msra.mxu1 %v51_v20  ;;  %v614_v21 = vld [vmem:[%s942_s2] ss:$0 sm:$0xff]  ;;  %s755_s2 = smov [#allocation5]  }
  0xe4   :  { %s602_s3 = sshll.u32 %s755_s2, 4  ;;  %s603_s3 = int_to_ptr.vmem [resolvable:$true] %s602_s3 }
  0xe5   :  { %v232_v26 = vpop.permute.xlu1 %231  ;;  %v234_v27 = vpop.permute.xlu0 %233  ;;  %p700_p6 = scmp.lt.s32.totalorder %s603_s3, %s603_s3 }
  0xe6   :  { %v237_v54 = vadd.f32 %v232_v26, %v229_v44  ;;  %v238_v55 = vadd.f32 %v234_v27, %v230_v45  ;;  %v617_v26 = vld [vmem:[%s944_s4] ss:$0 sm:$0xff]  ;;  %s695_s4 = scalar_lea.vmem %s603_s3, 256 }
  0xe7   :  { %p696_p5 = scmp.ne.s32.totalorder %s603_s3, %s695_s4  ;;  %p701_p7 = scmp.lt.s32.totalorder %s695_s4, %s695_s4 }
  0xe9   :  { %v240_v32 = vpop.permute.xlu1 %239  ;;  %v242_v33 = vpop.permute.xlu0 %241  ;;  %p702_p8 = por %p701_p7, %p700_p6 }
  0xea   :  { %v245_v52 = vadd.f32 %v240_v32, %v237_v54  ;;  %v246_v53 = vadd.f32 %v242_v33, %v238_v55 }
  0xeb   :  { %p703_p9 = pnand %p702_p8, %p696_p5 }
  0xed   :  { %v248_v38 = vpop.permute.xlu1 %247  ;;  %v250_v39 = vpop.permute.xlu0 %249 }
  0xee   :  { %v253_v58 = vadd.f32 %v248_v38, %v245_v52  ;;  %v254_v59 = vadd.f32 %v250_v39, %v246_v53 }
  0xf1   :  { %v256_v42 = vpop.permute.xlu1 %255  ;;  %v258_v43 = vpop.permute.xlu0 %257 }
  0xf2   :  { %v261_v60 = vadd.f32 %v256_v42, %v253_v58  ;;  %v262_v61 = vadd.f32 %v258_v43, %v254_v59 }
  0xf5   :  { %v264_v48 = vpop.permute.xlu1 %263  ;;  %v266_v49 = vpop.permute.xlu0 %265 }
  0xf6   :  { %v269_v2 = vadd.f32 %v264_v48, %v261_v60  ;;  %v270_v3 = vadd.f32 %v266_v49, %v262_v61 }
  0xf9   :  { %v272_v56 = vpop.permute.xlu1 %271  ;;  %v274_v57 = vpop.permute.xlu0 %273 }
  0xfa   :  { %v277_v4 = vadd.f32 %v272_v56, %v269_v2  ;;  %v278_v5 = vadd.f32 %v274_v57, %v270_v3  ;;  %v754_v2 = vmov 1966171168  }
  0xfb   :  { %v562_v3 = vunpack.c.l.s4 %v754_v2 }
  0xfd   :  { %v280_v62 = vpop.permute.xlu1 %279  ;;  %v282_v63 = vpop.permute.xlu0 %281 }
  0xfe   :  { %v285_v8 = vadd.f32 %v280_v62, %v277_v4  ;;  %v286_v9 = vadd.f32 %v282_v63, %v278_v5  ;;  %v564_v4 = vlaneseq  ;;  %v563_v5 = vunpack.c.0.s8 %v562_v3 }
 0x101   :  { %v288_v6 = vpop.permute.xlu1 %287  ;;  %v290_v7 = vpop.permute.xlu0 %289 }
 0x102   :  { %v293_v10 = vadd.f32 %v288_v6, %v285_v8  ;;  %v294_v11 = vadd.f32 %v290_v7, %v286_v9  ;;  %v565_v6 = vshrl.u32 %v564_v4, 7 }
 0x104   :  { %v566_v7 = vsub.s32 %v563_v5, %v565_v6 }
 0x105   :  { %v296_v12 = vpop.permute.xlu1 %295  ;;  %v298_v13 = vpop.permute.xlu0 %297 }
 0x106   :  { %v301_v14 = vadd.f32 %v296_v12, %v293_v10  ;;  %v302_v15 = vadd.f32 %v298_v13, %v294_v11  ;;  %v585_v10 = vsub.s32 0, %v565_v6 }
 0x108   :  { %v304_v16 = vmul.f32 0.00390625, %v302_v15  ;;  %v303_v17 = vmul.f32 0.00390625, %v301_v14 }
 0x10a   :  { %v313_v18 = vrot.slane %v304_v16, 7 }
 0x10c   :  { %v315_v19 = vsel %vm314_vm2, %v313_v18, %v303_v17  ;;  %vm558_vm2 = vcmask 523264  }
 0x10d   :  { %627 = vmatmul.mubr.msk.f32.vlgmr.msra.gmra.mxu0 %vm316_vm3, %v315_v19 }
 0x1cd   :  { %v389_v22 = vpop.f32.mrf.mxu0 }
 0x1ce   :  { %v390_v23 = vadd.f32 %v614_v21, %v389_v22 }
 0x1cf   :  { %v628_v24 = vpop.f32.mrf.mxu0 }
 0x1d0   :  { %v393_v25 = vmax.f32 %v390_v23, 0.0 }
 0x1d2   :  { %632 = vmatmul.mubr.msk.f32.vlgmr.msra.gmra.mxu1 %vm400_vm4, %v393_v25 }
 0x292   :  { %v470_v27 = vpop.f32.mrf.mxu1 }
 0x293   :  { %v471_v28 = vadd.f32 %v617_v26, %v470_v27 }
 0x294   :  { %v633_v29 = vpop.f32.mrf.mxu1 }
 0x295   :  { %v619_v30 = vmul.f32 -1.442695, %v471_v28 }
 0x297   :  { %671 = vpow2.f32 %v619_v30 }
 0x2a4   :  { %v672_v31 = vpop.eup %671 }
 0x2a5   :  { %v477_v32 = vadd.f32 1.0, %v672_v31 }
 0x2a7   :  { %673 = vrcp.f32 %v477_v32 }
 0x2b4   :  { %v674_v33 = vpop.eup %673 }
 0x2b5   :  { %484 = vrot.lane.b32.xlu1 %v674_v33, %s721_s22  ;;  %481 = vrot.lane.b32.xlu0 %v674_v33, %s753_s1 }
 0x2b9   :  { %490 = vrot.lane.b32.xlu1 %v674_v33, %s749_s27  ;;  %487 = vrot.lane.b32.xlu0 %v674_v33, %s750_s30 }
 0x2bd   :  { %496 = vrot.lane.b32.xlu1 %v674_v33, %s747_s25  ;;  %493 = vrot.lane.b32.xlu0 %v674_v33, %s748_s26 }
 0x2c1   :  { %502 = vrot.lane.b32.xlu1 %v674_v33, %s745_s24  ;;  %499 = vrot.lane.b32.xlu0 %v674_v33, %s746_s0 }
 0x2c5   :  { %508 = vrot.lane.b32.xlu1 %v674_v33, %s743_s20  ;;  %505 = vrot.lane.b32.xlu0 %v674_v33, %s744_s23 }
 0x2c9   :  { %514 = vrot.lane.b32.xlu1 %v674_v33, %s741_s18  ;;  %511 = vrot.lane.b32.xlu0 %v674_v33, %s742_s19 }
 0x2cd   :  { %520 = vrot.lane.b32.xlu1 %v674_v33, %s739_s16  ;;  %517 = vrot.lane.b32.xlu0 %v674_v33, %s740_s17 }
 0x2d1   :  { %523 = vrot.lane.b32.xlu0 %v674_v33, %s738_s15 }
 0x327   :  { %v485_v34 = vpop.permute.xlu1 %484  ;;  %v482_v35 = vpop.permute.xlu0 %481 }
 0x328   :  { %v526_v36 = vsel %vm316_vm3, %v674_v33, %v482_v35 }
 0x329   :  { %v527_v38 = vsel %vm400_vm4, %v526_v36, %v485_v34 }
 0x32b   :  { %v491_v37 = vpop.permute.xlu1 %490  ;;  %v488_v39 = vpop.permute.xlu0 %487 }
 0x32c   :  { %v529_v46 = vsel %vm528_vm5, %v527_v38, %v488_v39 }
 0x32d   :  { %v531_v40 = vsel %vm530_vm6, %v529_v46, %v491_v37 }
 0x32f   :  { %v497_v47 = vpop.permute.xlu1 %496  ;;  %v494_v41 = vpop.permute.xlu0 %493 }
 0x330   :  { %v533_v42 = vsel %vm532_vm7, %v531_v40, %v494_v41 }
 0x331   :  { %v535_v50 = vsel %vm534_vm8, %v533_v42, %v497_v47 }
 0x333   :  { %v503_v43 = vpop.permute.xlu1 %502  ;;  %v500_v51 = vpop.permute.xlu0 %499 }
 0x334   :  { %v537_v44 = vsel %vm536_vm9, %v535_v50, %v500_v51 }
 0x335   :  { %v539_v48 = vsel %vm538_vm10, %v537_v44, %v503_v43 }
 0x337   :  { %v509_v45 = vpop.permute.xlu1 %508  ;;  %v506_v49 = vpop.permute.xlu0 %505 }
 0x338   :  { %v541_v54 = vsel %vm540_vm11, %v539_v48, %v506_v49 }
 0x339   :  { %v543_v52 = vsel %vm542_vm12, %v541_v54, %v509_v45 }
 0x33b   :  { %v515_v55 = vpop.permute.xlu1 %514  ;;  %v512_v53 = vpop.permute.xlu0 %511 }
 0x33c   :  { %v545_v56 = vsel %vm544_vm13, %v543_v52, %v512_v53 }
 0x33d   :  { %v547_v57 = vsel %vm546_vm14, %v545_v56, %v515_v55 }
 0x33f   :  { %v518_v58 = vpop.permute.xlu0 %517  ;;  %v521_v59 = vpop.permute.xlu1 %520 }
 0x340   :  { %v549_v60 = vsel %vm548_vm15, %v547_v57, %v518_v58 }
 0x341   :  { %v551_v62 = vsel %vm550_vm0, %v549_v60, %v521_v59 }
 0x343   :  { %v524_v61 = vpop.permute.xlu0 %523 }
 0x344   :  { %v553_v63 = vsel %vm552_vm1, %v551_v62, %v524_v61 }
 0x345   :  { %555 = vrot.lane.b32.xlu1 %v553_v63, %s737_s14 }
 0x3b7   :  { %v556_v8 = vpop.permute.xlu1 %555 }
 0x3b8   :  { %v559_v9 = vsel %vm558_vm2, %v553_v63, %v556_v8 }
 0x3b9   :  { %v567_v11 = vrot.slane %v559_v9, %v566_v7 }
 0x3bb   :  { %v568_v12 = vcombine.high %v567_v11, %v567_v11  ;;  %v575_v13 = vrot.slane %v567_v11, %v566_v7 }
 0x3bd   :  { %v582_v14 = vrot.slane %v568_v12, %v566_v7  ;;  %v586_v15 = vrot.slane %v575_v13, %v585_v10 }
 0x3bf   :  { %v590_v16 = vrot.slane %v582_v14, %v585_v10  ;;  %v593_v17 = vmul.f32 %v586_v15, %v792_v0 }
 0x3c1   :  { %v594_v18 = vmul.f32 %v590_v16, %v794_v1  ;;  %595 = vst [vmem:[#allocation5] sm:$0xff] %v593_v17 }
 0x3c3   :  { %596 = vst [vmem:[#allocation5 + $0x8] sm:$0xff] %v594_v18 }
 0x3c4   :  { %706 = shalt.err (!%p703_p9)
}
 0x3c5   :  { %608 = dma.vmem_to_hbm [thread:$0]  %s603_s3, 256, %s945_s5, [#allocation4], %s720_s21, %s720_s21, %s721_s22  }
 0x3c6   :  { %717 = dma.done.wait [#allocation4], 256  }
 0x3c7   :  { %718 = vsyncadd [#allocation4], 4294967040 }
 0x3c8   :  { %612 = vsyncpa [#allocation3], 1 }
 0x3c9   :  { %613 = vsyncpa [#allocation4], 1 }

</bundles_post_ra>
